<compile_context>
chip_gen: v7x
topology: tpu7x:2x2x1
jax: 0.10.0
libtpu: 0.0.40
codegen_flags: <defaults>
</compile_context>

<pallas_src>
import functools

import jax
import jax.numpy as jnp
from jax.experimental import pallas as pl
from jax.experimental.pallas import tpu as pltpu


def _round_up(n: int, m: int) -> int:
    return (n + m - 1) // m * m


def _encoder_kernel(x_ref, w1_ref, b1_ref, w2_ref, b2_ref, o_ref):
    # Layer 1: x @ W1 + b1, ReLU.  bf16 operands on the MXU, f32 accumulate,
    # f32 epilogue (bias add + ReLU on the VPU).
    x = x_ref[...].astype(jnp.bfloat16)
    h = jnp.dot(x, w1_ref[...], preferred_element_type=jnp.float32) + b1_ref[...]
    h = jnp.maximum(h, 0.0)
    # Layer 2: h @ W2 + b2.
    y = jnp.dot(h.astype(jnp.bfloat16), w2_ref[...],
                preferred_element_type=jnp.float32) + b2_ref[...]
    o_ref[...] = y.astype(o_ref.dtype)


@functools.partial(jax.jit, static_argnames=("block_b",))
def encoder_forward(x, w1, b1, w2, b2, *, block_b=256):
    """Encoder forward: Linear -> ReLU -> Linear.

    x:  (B, input_dim)        float32
    w1: (input_dim, hidden)   b1: (1, hidden)
    w2: (hidden, emb_dim)     b2: (1, emb_dim)
    Works for any B / feature sizes (zero-pads to TPU-friendly shapes).
    """
    B, d_in = x.shape
    hidden = w1.shape[1]
    d_out = w2.shape[1]

    # Lane-dense feature dims (multiples of 128) and a large, 8-aligned M tile.
    d_in_p = _round_up(d_in, 128)
    h_p = _round_up(hidden, 128)
    d_out_p = _round_up(d_out, 128)
    blk = max(8, min(block_b, _round_up(B, 8)))
    b_p = _round_up(B, blk)
    grid = (b_p // blk,)

    # Zero-padding keeps the math exact: padded x columns hit zero weight
    # rows, padded hidden/out columns get zero weights + zero bias and are
    # sliced off at the end (ReLU(0) == 0).
    x_p = jnp.zeros((b_p, d_in_p), x.dtype).at[:B, :d_in].set(x)
    w1_p = jnp.zeros((d_in_p, h_p), jnp.bfloat16).at[:d_in, :hidden].set(
        w1.astype(jnp.bfloat16))
    b1_p = jnp.zeros((1, h_p), jnp.float32).at[:, :hidden].set(
        b1.astype(jnp.float32))
    w2_p = jnp.zeros((h_p, d_out_p), jnp.bfloat16).at[:hidden, :d_out].set(
        w2.astype(jnp.bfloat16))
    b2_p = jnp.zeros((1, d_out_p), jnp.float32).at[:, :d_out].set(
        b2.astype(jnp.float32))

    # Cost estimate so XLA schedules around this call correctly.
    flops = 2 * b_p * (d_in_p * h_p + h_p * d_out_p)
    bytes_accessed = (b_p * d_in_p * 4            # x
                      + d_in_p * h_p * 2 + h_p * 4   # w1 (bf16) + b1
                      + h_p * d_out_p * 2 + d_out_p * 4  # w2 (bf16) + b2
                      + b_p * d_out_p * 4)         # out
    cost = pl.CostEstimate(flops=flops, transcendentals=0,
                           bytes_accessed=bytes_accessed)

    # Explicit VMEM budget: double-buffered x/out tiles + (double-buffered,
    # constant-index) weights/biases + f32 intermediates, with headroom.
    tile_bytes = blk * d_in_p * 4 + blk * d_out_p * 4 + blk * h_p * 4
    weight_bytes = d_in_p * h_p * 2 + h_p * 4 + h_p * d_out_p * 2 + d_out_p * 4
    vmem_needed = 2 * (tile_bytes + weight_bytes)
    vmem_limit = int(min(64 * 1024 * 1024, max(32 * 1024 * 1024, 2 * vmem_needed)))

    out_p = pl.pallas_call(
        _encoder_kernel,
        out_shape=jax.ShapeDtypeStruct((b_p, d_out_p), x.dtype),
        grid_spec=pltpu.PrefetchScalarGridSpec(
            num_scalar_prefetch=0,
            grid=grid,
            in_specs=[
                pl.BlockSpec((blk, d_in_p), lambda i: (i, 0)),     # x tile
                pl.BlockSpec((d_in_p, h_p), lambda i: (0, 0)),     # w1 (full)
                pl.BlockSpec((1, h_p), lambda i: (0, 0)),          # b1
                pl.BlockSpec((h_p, d_out_p), lambda i: (0, 0)),    # w2 (full)
                pl.BlockSpec((1, d_out_p), lambda i: (0, 0)),      # b2
            ],
            out_specs=pl.BlockSpec((blk, d_out_p), lambda i: (i, 0)),
        ),
        compiler_params=pltpu.CompilerParams(
            dimension_semantics=("parallel",),
            vmem_limit_bytes=vmem_limit,
        ),
        cost_estimate=cost,
    )(x_p, w1_p, b1_p, w2_p, b2_p)

    # Strip batch / feature padding.
    return out_p[:B, :d_out]


def _init_linear(key, fan_in, fan_out, dtype=jnp.float32):
    # Deterministic init mimicking PyTorch nn.Linear default:
    # U(-1/sqrt(fan_in), 1/sqrt(fan_in)).
    kw, kb = jax.random.split(key)
    bound = 1.0 / jnp.sqrt(jnp.asarray(fan_in, dtype))
    w = jax.random.uniform(kw, (fan_in, fan_out), dtype, minval=-bound, maxval=bound)
    b = jax.random.uniform(kb, (1, fan_out), dtype, minval=-bound, maxval=bound)
    return w, b


if __name__ == "__main__":
    input_dim = 32
    hidden_dim = 64
    embedding_dim = 16
    batch = 512  # 2 grid steps at block_b=256 -> both v7x TensorCores busy.

    key = jax.random.PRNGKey(0)
    kx, k1, k2 = jax.random.split(key, 3)

    x = jax.random.normal(kx, (batch, input_dim), jnp.float32)
    w1, b1 = _init_linear(k1, input_dim, hidden_dim)
    w2, b2 = _init_linear(k2, hidden_dim, embedding_dim)

    out = encoder_forward(x, w1, b1, w2, b2, block_b=256)
    out = jax.block_until_ready(out)

    # Reference in plain JAX with the same bf16-operand / f32-accumulate math.
    h_ref = jnp.maximum(
        jnp.dot(x.astype(jnp.bfloat16), w1.astype(jnp.bfloat16),
                preferred_element_type=jnp.float32) + b1, 0.0)
    ref = jnp.dot(h_ref.astype(jnp.bfloat16), w2.astype(jnp.bfloat16),
                  preferred_element_type=jnp.float32) + b2

    assert out.shape == (batch, embedding_dim)
    assert jnp.allclose(out, ref, atol=1e-2, rtol=1e-2), float(
        jnp.max(jnp.abs(out - ref)))

    print("KERNEL_OK")
</pallas_src>

<mosaic_0001>
module attributes {stable_mosaic.version = 11 : i64} {
  func.func @_encoder_kernel(%arg0: i32, %arg1: memref<256x128xf32, #tpu.memory_space<vmem>>, %arg2: memref<128x128xbf16, #tpu.memory_space<vmem>>, %arg3: memref<1x128xf32, #tpu.memory_space<vmem>>, %arg4: memref<128x128xbf16, #tpu.memory_space<vmem>>, %arg5: memref<1x128xf32, #tpu.memory_space<vmem>>, %arg6: memref<256x128xf32, #tpu.memory_space<vmem>>) attributes {dimension_semantics = [#tpu.dimension_semantics<parallel>], iteration_bounds = array<i64: 2>, scalar_prefetch = 0 : i64, scratch_operands = 0 : i64, tpu.core_type = #tpu.core_type<tc>, window_params = [{transform_indices = @transform_0, window_bounds = array<i64: 256, 128>}, {pipeline_mode = #tpu.pipeline_mode<synchronous>, transform_indices = @transform_1, window_bounds = array<i64: 128, 128>}, {pipeline_mode = #tpu.pipeline_mode<synchronous>, transform_indices = @transform_2, window_bounds = array<i64: 1, 128>}, {pipeline_mode = #tpu.pipeline_mode<synchronous>, transform_indices = @transform_3, window_bounds = array<i64: 128, 128>}, {pipeline_mode = #tpu.pipeline_mode<synchronous>, transform_indices = @transform_4, window_bounds = array<i64: 1, 128>}, {transform_indices = @transform_5, window_bounds = array<i64: 256, 128>}]} {
    %c0 = arith.constant 0 : index
    %c0_0 = arith.constant 0 : index
    %0 = vector.load %arg1[%c0, %c0_0] : memref<256x128xf32, #tpu.memory_space<vmem>>, vector<256x128xf32>
    %1 = arith.truncf %0 : vector<256x128xf32> to vector<256x128xbf16>
    %c0_1 = arith.constant 0 : index
    %c0_2 = arith.constant 0 : index
    %2 = vector.load %arg2[%c0_1, %c0_2] : memref<128x128xbf16, #tpu.memory_space<vmem>>, vector<128x128xbf16>
    %cst = arith.constant dense<0.000000e+00> : vector<256x128xf32>
    %3 = tpu.matmul %1, %2, %cst {dimension_numbers = #tpu.dot_dimension_numbers<[1], [0], [0], [1], [0, 0, 1, 1], [], []>} : vector<256x128xbf16>, vector<128x128xbf16>, vector<256x128xf32> -> vector<256x128xf32>
    %c0_3 = arith.constant 0 : index
    %c0_4 = arith.constant 0 : index
    %4 = vector.load %arg3[%c0_3, %c0_4] : memref<1x128xf32, #tpu.memory_space<vmem>>, vector<1x128xf32>
    %5 = vector.broadcast %4 : vector<1x128xf32> to vector<256x128xf32>
    %6 = arith.addf %3, %5 : vector<256x128xf32>
    %cst_5 = arith.constant 0.000000e+00 : f32
    %7 = vector.broadcast %cst_5 : f32 to vector<256x128xf32>
    %8 = arith.maximumf %6, %7 : vector<256x128xf32>
    %9 = arith.truncf %8 : vector<256x128xf32> to vector<256x128xbf16>
    %c0_6 = arith.constant 0 : index
    %c0_7 = arith.constant 0 : index
    %10 = vector.load %arg4[%c0_6, %c0_7] : memref<128x128xbf16, #tpu.memory_space<vmem>>, vector<128x128xbf16>
    %cst_8 = arith.constant dense<0.000000e+00> : vector<256x128xf32>
    %11 = tpu.matmul %9, %10, %cst_8 {dimension_numbers = #tpu.dot_dimension_numbers<[1], [0], [0], [1], [0, 0, 1, 1], [], []>} : vector<256x128xbf16>, vector<128x128xbf16>, vector<256x128xf32> -> vector<256x128xf32>
    %c0_9 = arith.constant 0 : index
    %c0_10 = arith.constant 0 : index
    %12 = vector.load %arg5[%c0_9, %c0_10] : memref<1x128xf32, #tpu.memory_space<vmem>>, vector<1x128xf32>
    %13 = vector.broadcast %12 : vector<1x128xf32> to vector<256x128xf32>
    %14 = arith.addf %11, %13 : vector<256x128xf32>
    %c0_11 = arith.constant 0 : index
    %c0_12 = arith.constant 0 : index
    %15 = vector.load %arg6[%c0_11, %c0_12] : memref<256x128xf32, #tpu.memory_space<vmem>>, vector<256x128xf32>
    tpu.vector_store %arg6[%c0_11, %c0_12], %14 {strides = array<i32>} : memref<256x128xf32, #tpu.memory_space<vmem>>, vector<256x128xf32>,
    return
  }
  func.func @transform_0(%arg0: i32) -> (i32, i32) {
    %c0_i32 = arith.constant 0 : i32
    %c0_i32_0 = arith.constant 0 : i32
    return %arg0, %c0_i32 : i32, i32
  }
  func.func @transform_1(%arg0: i32) -> (i32, i32) {
    %c0_i32 = arith.constant 0 : i32
    %c0_i32_0 = arith.constant 0 : i32
    %c0_i32_1 = arith.constant 0 : i32
    return %c0_i32, %c0_i32_0 : i32, i32
  }
  func.func @transform_2(%arg0: i32) -> (i32, i32) {
    %c0_i32 = arith.constant 0 : i32
    %c0_i32_0 = arith.constant 0 : i32
    %c0_i32_1 = arith.constant 0 : i32
    return %c0_i32, %c0_i32_0 : i32, i32
  }
  func.func @transform_3(%arg0: i32) -> (i32, i32) {
    %c0_i32 = arith.constant 0 : i32
    %c0_i32_0 = arith.constant 0 : i32
    %c0_i32_1 = arith.constant 0 : i32
    return %c0_i32, %c0_i32_0 : i32, i32
  }
  func.func @transform_4(%arg0: i32) -> (i32, i32) {
    %c0_i32 = arith.constant 0 : i32
    %c0_i32_0 = arith.constant 0 : i32
    %c0_i32_1 = arith.constant 0 : i32
    return %c0_i32, %c0_i32_0 : i32, i32
  }
  func.func @transform_5(%arg0: i32) -> (i32, i32) {
    %c0_i32 = arith.constant 0 : i32
    %c0_i32_0 = arith.constant 0 : i32
    return %arg0, %c0_i32 : i32, i32
  }
}

</mosaic_0001>

<bundles_post_ra>
// kernel: encoder_forward.1
= control target key start
LH: loop header
LB: loop body
LE: loop exit
PB: predicated region body
PF: predicated region fallthrough
CT: control target
= control target key end

     0   :  { %s1112_s18 = smov 0   ;;  %s1326_s0 = inlined_call_operand.vmem [shape: f32[512,128], index: 0, kind: input, shape index: {}]   ;;  %s1327_s1 = inlined_call_operand.vmem [shape: bf16[128,128], index: 1, kind: input, shape index: {}]   ;;  %s1328_s2 = inlined_call_operand.vmem [shape: f32[1,128], index: 2, kind: input, shape index: {}]   ;;  %s1329_s3 = inlined_call_operand.vmem [shape: bf16[128,128], index: 3, kind: input, shape index: {}]   ;;  %s1330_s4 = inlined_call_operand.vmem [shape: f32[1,128], index: 4, kind: input, shape index: {}]   ;;  %s1331_s5 = inlined_call_operand.vmem [shape: f32[512,128], index: 5, kind: output, shape index: {}]  }
   0x1 LB: > { %s877_s19 = sadd.s32 4294967295, %s1080_s18   ;;  %p881_p0 = scmp.ge.s32.totalorder %s1080_s18, 1  ;;  %s1080_s18 = sphi %s1112_s18, %s15_s18  }
   0x2   : > { %p188_p1 = scmp.lt.s32.totalorder %s1080_s18, 3 }
   0x4   : > { %p189_p2 = pnand %p881_p0, %p188_p1 }
   0x5   : > { %v1058_v0 = vld [vmem:[%s1327_s1] sm:$0xff] (!%p189_p2)   ;;  %s882_s22 = sshll.u32 (!%p189_p2), %s877_s19, 5  ;;  %v1059_v1 = vld [vmem:[%s1327_s1 + $0x8] sm:$0xff] (!%p189_p2)   ;;  %v1060_v2 = vld [vmem:[%s1327_s1 + $0x10] sm:$0xff] (!%p189_p2)  }
   0x6   : > { %192 = sbr.rel (%p189_p2) target bundleno = 534 (0x216), region = 40  ;;  %p217_p3 = scmp.lt.s32.totalorder (!%p189_p2), %s882_s22, 63  ;;  %954 = vmatprep.subr.bf16.mxu0 (!%p189_p2), %v1058_v0  ;;  %v1061_v3 = vld [vmem:[%s1327_s1 + $0x18] sm:$0xff] (!%p189_p2)   ;;  %v1062_v7 = vld [vmem:[%s1327_s1 + $0x20] sm:$0xff] (!%p189_p2)   ;;  %v1063_v8 = vld [vmem:[%s1327_s1 + $0x28] sm:$0xff] (!%p189_p2)  }
   0x7   : > { %955 = vmatpush3.bf16.msra.mxu0 (!%p189_p2), %v1058_v0  ;;  %v1064_v9 = vld [vmem:[%s1327_s1 + $0x30] sm:$0xff] (!%p189_p2)   ;;  %v1066_v10 = vld [vmem:[%s1329_s3] sm:$0xff] (!%p189_p2)   ;;  %v1067_v11 = vld [vmem:[%s1329_s3 + $0x8] sm:$0xff] (!%p189_p2)  }
   0x8   : > { %956 = vmatprep.subr.bf16.mxu0 (!%p189_p2), %v1059_v1  ;;  %1002 = vmatprep.subr.bf16.mxu1 (!%p189_p2), %v1066_v10  ;;  %v1068_v12 = vld [vmem:[%s1329_s3 + $0x10] sm:$0xff] (!%p189_p2)   ;;  %v1065_v13 = vld [vmem:[%s1327_s1 + $0x38] sm:$0xff] (!%p189_p2)   ;;  %v1070_v21 = vld [vmem:[%s1329_s3 + $0x20] sm:$0xff] (!%p189_p2)  }
   0x9   : > { %1003 = vmatpush3.bf16.msra.mxu1 (!%p189_p2), %v1066_v10  ;;  %v1069_v16 = vld [vmem:[%s1329_s3 + $0x18] sm:$0xff] (!%p189_p2)   ;;  %v1071_v24 = vld [vmem:[%s1329_s3 + $0x28] sm:$0xff] (!%p189_p2)   ;;  %v1072_v62 = vld [vmem:[%s1329_s3 + $0x30] sm:$0xff] (!%p189_p2)  }
   0xa   : > { %1004 = vmatprep.subr.bf16.mxu1 (!%p189_p2), %v1067_v11  ;;  %v1073_v63 = vld [vmem:[%s1329_s3 + $0x38] sm:$0xff] (!%p189_p2)   ;;  %v1213_v0 = vld [vmem:[%s1328_s2] ss:$0 sm:$0xff] (!%p189_p2) }
   0xb   : > { %957 = vmatpush3.bf16.msra.mxu0 (!%p189_p2), %v1059_v1 }
   0xc   : > { %958 = vmatprep.subr.bf16.mxu0 (!%p189_p2), %v1060_v2 }
   0xd   : > { %s1333_s22 = smov (!%p217_p3, %s882_s22), 63  ;;  %1005 = vmatpush3.bf16.msra.mxu1 %v1067_v11 }
   0xe   : > { %s883_s27 = sshll.u32 %s1333_s22, 3  ;;  %1006 = vmatprep.subr.bf16.mxu1 %v1068_v12 }
   0xf   : > { %s1137_s30 = scalar_lea.vmem %s1326_s0, %s883_s27  ;;  %959 = vmatpush3.bf16.msra.mxu0 %v1060_v2  ;;  %s1257_s16 = scalar_lea.vmem %s1331_s5, %s883_s27 }
  0x10   : > { %v229_v4 = vld [vmem:[%s1137_s30] sm:$0xff]  ;;  %v230_v5 = vld [vmem:[%s1137_s30 + $0x8] sm:$0xff]  ;;  %960 = vmatprep.subr.bf16.mxu0 %v1061_v3  ;;  %v231_v14 = vld [vmem:[%s1137_s30 + $0x10] sm:$0xff] }
  0x11   : > { %v261_v6 = vpack.c.bf16 %v230_v5, %v229_v4  ;;  %v232_v15 = vld [vmem:[%s1137_s30 + $0x18] sm:$0xff]  ;;  %v233_v17 = vld [vmem:[%s1137_s30 + $0x20] sm:$0xff]  ;;  %v234_v18 = vld [vmem:[%s1137_s30 + $0x28] sm:$0xff]  ;;  %1007 = vmatpush3.bf16.msra.mxu1 %v1068_v12 }
  0x12   : > { %v262_v19 = vpack.c.bf16 %v232_v15, %v231_v14  ;;  %v263_v20 = vpack.c.bf16 %v234_v18, %v233_v17  ;;  %1008 = vmatprep.subr.bf16.mxu1 %v1069_v16  ;;  %v235_v22 = vld [vmem:[%s1137_s30 + $0x30] sm:$0xff]  ;;  %v236_v23 = vld [vmem:[%s1137_s30 + $0x38] sm:$0xff]  ;;  %v237_v25 = vld [vmem:[%s1137_s30 + $0x40] sm:$0xff] }
  0x13   : > { %970 = vmatprep.mubr.bf16.mxu0 %v261_v6  ;;  %961 = vmatpush3.bf16.msra.mxu0 %v1061_v3  ;;  %v238_v26 = vld [vmem:[%s1137_s30 + $0x48] sm:$0xff]  ;;  %v264_v27 = vpack.c.bf16 %v236_v23, %v235_v22  ;;  %v239_v29 = vld [vmem:[%s1137_s30 + $0x50] sm:$0xff]  ;;  %v240_v30 = vld [vmem:[%s1137_s30 + $0x58] sm:$0xff] }
  0x14   : > { %962 = vmatprep.subr.bf16.mxu0 %v1062_v7  ;;  %v265_v28 = vpack.c.bf16 %v238_v26, %v237_v25  ;;  %v241_v31 = vld [vmem:[%s1137_s30 + $0x60] sm:$0xff]  ;;  %v242_v32 = vld [vmem:[%s1137_s30 + $0x68] sm:$0xff]  ;;  %v266_v33 = vpack.c.bf16 %v240_v30, %v239_v29  ;;  %v243_v35 = vld [vmem:[%s1137_s30 + $0x70] sm:$0xff] }
  0x15   : > { %1009 = vmatpush3.bf16.msra.mxu1 %v1069_v16  ;;  %v267_v34 = vpack.c.bf16 %v242_v32, %v241_v31  ;;  %v244_v36 = vld [vmem:[%s1137_s30 + $0x78] sm:$0xff]  ;;  %v245_v37 = vld [vmem:[%s1137_s30 + $0x80] sm:$0xff]  ;;  %v246_v38 = vld [vmem:[%s1137_s30 + $0x88] sm:$0xff] }
  0x16   : > { %1010 = vmatprep.subr.bf16.mxu1 %v1070_v21  ;;  %v268_v39 = vpack.c.bf16 %v244_v36, %v243_v35  ;;  %v269_v40 = vpack.c.bf16 %v246_v38, %v245_v37  ;;  %v247_v41 = vld [vmem:[%s1137_s30 + $0x90] sm:$0xff]  ;;  %v248_v42 = vld [vmem:[%s1137_s30 + $0x98] sm:$0xff]  ;;  %v249_v43 = vld [vmem:[%s1137_s30 + $0xa0] sm:$0xff] }
  0x17   : > { %963 = vmatpush3.bf16.msra.mxu0 %v1062_v7  ;;  %v250_v44 = vld [vmem:[%s1137_s30 + $0xa8] sm:$0xff]  ;;  %v270_v45 = vpack.c.bf16 %v248_v42, %v247_v41  ;;  %v251_v47 = vld [vmem:[%s1137_s30 + $0xb0] sm:$0xff]  ;;  %v252_v48 = vld [vmem:[%s1137_s30 + $0xb8] sm:$0xff] }
  0x18   : > { %964 = vmatprep.subr.bf16.mxu0 %v1063_v8  ;;  %v271_v46 = vpack.c.bf16 %v250_v44, %v249_v43  ;;  %v253_v49 = vld [vmem:[%s1137_s30 + $0xc0] sm:$0xff]  ;;  %v254_v50 = vld [vmem:[%s1137_s30 + $0xc8] sm:$0xff]  ;;  %v272_v51 = vpack.c.bf16 %v252_v48, %v251_v47  ;;  %v255_v53 = vld [vmem:[%s1137_s30 + $0xd0] sm:$0xff] }
  0x19   : > { %1011 = vmatpush3.bf16.msra.mxu1 %v1070_v21  ;;  %v273_v52 = vpack.c.bf16 %v254_v50, %v253_v49  ;;  %v256_v54 = vld [vmem:[%s1137_s30 + $0xd8] sm:$0xff]  ;;  %v257_v55 = vld [vmem:[%s1137_s30 + $0xe0] sm:$0xff]  ;;  %v258_v56 = vld [vmem:[%s1137_s30 + $0xe8] sm:$0xff] }
  0x1a   : > { %1012 = vmatprep.subr.bf16.mxu1 %v1071_v24  ;;  %v274_v57 = vpack.c.bf16 %v256_v54, %v255_v53  ;;  %v275_v58 = vpack.c.bf16 %v258_v56, %v257_v55  ;;  %v259_v59 = vld [vmem:[%s1137_s30 + $0xf0] sm:$0xff]  ;;  %v260_v60 = vld [vmem:[%s1137_s30 + $0xf8] sm:$0xff] }
  0x1b   : > { %965 = vmatpush3.bf16.msra.mxu0 %v1063_v8  ;;  %v276_v61 = vpack.c.bf16 %v260_v60, %v259_v59 }
  0x1c   : > { %966 = vmatprep.subr.bf16.mxu0 %v1064_v9 }
  0x1d   : > { %1013 = vmatpush3.bf16.msra.mxu1 %v1071_v24 }
  0x1e   : > { %1014 = vmatprep.subr.bf16.mxu1 %v1072_v62 }
  0x1f   : > { %967 = vmatpush3.bf16.msra.mxu0 %v1064_v9 }
  0x20   : > { %968 = vmatprep.subr.bf16.mxu0 %v1065_v13 }
  0x21   : > { %1015 = vmatpush3.bf16.msra.mxu1 %v1072_v62 }
  0x22   : > { %1016 = vmatprep.subr.bf16.mxu1 %v1073_v63 }
  0x23   : > { %969 = vmatpush3.bf16.msra.mxu0 %v1065_v13 }
  0x25   : > { %1017 = vmatpush3.bf16.msra.mxu1 %v1073_v63 }
  0x26   : > { %971 = vmatmul.mubr.bf16.vlgmr.msra.gmra.mrb[0].mxu0 %v262_v19 }
  0x27   : > { %974 = vmatprep.mubr.bf16.mxu0 %v263_v20 }
  0x2e   : > { %975 = vmatmul.mubr.bf16.gmra.mrb[4].mxu0 %v264_v27 }
  0x2f   : > { %978 = vmatprep.mubr.bf16.mxu0 %v265_v28 }
  0x36   : > { %979 = vmatmul.mubr.bf16.gmra.mrb[8].mxu0 %v266_v33 }
  0x37   : > { %982 = vmatprep.mubr.bf16.mxu0 %v267_v34 }
  0x3e   : > { %983 = vmatmul.mubr.bf16.gmra.mrb[12].mxu0 %v268_v39 }
  0x3f   : > { %986 = vmatprep.mubr.bf16.mxu0 %v269_v40 }
  0x46   : > { %987 = vmatmul.mubr.bf16.gmra.mrb[16].mxu0 %v270_v45 }
  0x47   : > { %990 = vmatprep.mubr.bf16.mxu0 %v271_v46 }
  0x4e   : > { %991 = vmatmul.mubr.bf16.gmra.mrb[20].mxu0 %v272_v51 }
  0x4f   : > { %994 = vmatprep.mubr.bf16.mxu0 %v273_v52 }
  0x56   : > { %995 = vmatmul.mubr.bf16.gmra.mrb[24].mxu0 %v274_v57 }
  0x57   : > { %998 = vmatprep.mubr.bf16.mxu0 %v275_v58 }
  0x5e   : > { %999 = vmatmul.mubr.bf16.gmra.mrb[28].mxu0 %v276_v61 }
  0xf9   : > { %v972_v1 = vpop.f32.mrb[0].mxu0 }
  0xfa   : > { %v391_v2 = vadd.f32 %v972_v1, %v1213_v0  ;;  %v382_v3 = vpop.f32.mrb[1].mxu0 }
  0xfb   : > { %v383_v4 = vadd.f32 %v1213_v0, %v382_v3  ;;  %v973_v5 = vpop.f32.mrb[2].mxu0 }
  0xfc   : > { %v394_v6 = vadd.f32 %v973_v5, %v1213_v0  ;;  %v385_v7 = vpop.f32.mrb[3].mxu0  ;;  %v511_v9 = vmax.f32 %v391_v2, 0.0 }
  0xfd   : > { %v386_v8 = vadd.f32 %v1213_v0, %v385_v7  ;;  %v509_v11 = vmax.f32 %v383_v4, 0.0 }
  0xfe   : > { %v512_v10 = vmax.f32 %v394_v6, 0.0 }
  0xff   : > { %v510_v12 = vmax.f32 %v386_v8, 0.0 }
 0x100   : > { %v542_v13 = vpack.c.bf16 %v512_v10, %v511_v9 }
 0x101   : > { %v976_v14 = vpop.f32.mrb[4].mxu0  ;;  %v541_v15 = vpack.c.bf16 %v510_v12, %v509_v11 }
 0x102   : > { %v407_v16 = vadd.f32 %v976_v14, %v1213_v0  ;;  %v398_v17 = vpop.f32.mrb[5].mxu0 }
 0x103   : > { %v399_v18 = vadd.f32 %v1213_v0, %v398_v17  ;;  %v977_v19 = vpop.f32.mrb[6].mxu0  ;;  %1018 = vmatprep.mubr.bf16.mxu1 %v541_v15 }
 0x104   : > { %v410_v20 = vadd.f32 %v977_v19, %v1213_v0  ;;  %v401_v21 = vpop.f32.mrb[7].mxu0  ;;  %1019 = vmatmul.mubr.bf16.vlgmr.msra.gmra.mrb[0].mxu1 %v542_v13  ;;  %v515_v23 = vmax.f32 %v407_v16, 0.0 }
 0x105   : > { %v402_v22 = vadd.f32 %v1213_v0, %v401_v21  ;;  %v513_v25 = vmax.f32 %v399_v18, 0.0 }
 0x106   : > { %v516_v24 = vmax.f32 %v410_v20, 0.0 }
 0x107   : > { %v514_v26 = vmax.f32 %v402_v22, 0.0 }
 0x108   : > { %v544_v27 = vpack.c.bf16 %v516_v24, %v515_v23 }
 0x109   : > { %v543_v28 = vpack.c.bf16 %v514_v26, %v513_v25  ;;  %v980_v29 = vpop.f32.mrb[8].mxu0 }
 0x10a   : > { %v423_v30 = vadd.f32 %v980_v29, %v1213_v0  ;;  %v414_v31 = vpop.f32.mrb[9].mxu0 }
 0x10b   : > { %v415_v32 = vadd.f32 %v1213_v0, %v414_v31  ;;  %v981_v33 = vpop.f32.mrb[10].mxu0  ;;  %1022 = vmatprep.mubr.bf16.mxu1 %v543_v28 }
 0x10c   : > { %v426_v34 = vadd.f32 %v981_v33, %v1213_v0  ;;  %v417_v35 = vpop.f32.mrb[11].mxu0  ;;  %1023 = vmatmul.mubr.bf16.gmra.mrb[4].mxu1 %v544_v27  ;;  %v519_v37 = vmax.f32 %v423_v30, 0.0 }
 0x10d   : > { %v418_v36 = vadd.f32 %v1213_v0, %v417_v35  ;;  %v517_v39 = vmax.f32 %v415_v32, 0.0 }
 0x10e   : > { %v520_v38 = vmax.f32 %v426_v34, 0.0 }
 0x10f   : > { %v518_v40 = vmax.f32 %v418_v36, 0.0 }
 0x110   : > { %v546_v41 = vpack.c.bf16 %v520_v38, %v519_v37 }
 0x111   : > { %v545_v42 = vpack.c.bf16 %v518_v40, %v517_v39  ;;  %v984_v43 = vpop.f32.mrb[12].mxu0 }
 0x112   : > { %v439_v44 = vadd.f32 %v984_v43, %v1213_v0  ;;  %v430_v45 = vpop.f32.mrb[13].mxu0 }
 0x113   : > { %v431_v46 = vadd.f32 %v1213_v0, %v430_v45  ;;  %v985_v47 = vpop.f32.mrb[14].mxu0  ;;  %1026 = vmatprep.mubr.bf16.mxu1 %v545_v42 }
 0x114   : > { %v442_v48 = vadd.f32 %v985_v47, %v1213_v0  ;;  %v433_v49 = vpop.f32.mrb[15].mxu0  ;;  %1027 = vmatmul.mubr.bf16.gmra.mrb[8].mxu1 %v546_v41  ;;  %v523_v51 = vmax.f32 %v439_v44, 0.0 }
 0x115   : > { %v434_v50 = vadd.f32 %v1213_v0, %v433_v49  ;;  %v521_v53 = vmax.f32 %v431_v46, 0.0 }
 0x116   : > { %v524_v52 = vmax.f32 %v442_v48, 0.0 }
 0x117   : > { %v522_v54 = vmax.f32 %v434_v50, 0.0  ;;  %v1250_v50 = vld [vmem:[%s1330_s4] ss:$0 sm:$0xff] }
 0x118   : > { %v548_v55 = vpack.c.bf16 %v524_v52, %v523_v51 }
 0x119   : > { %v547_v56 = vpack.c.bf16 %v522_v54, %v521_v53  ;;  %v988_v57 = vpop.f32.mrb[16].mxu0 }
 0x11a   : > { %v455_v58 = vadd.f32 %v988_v57, %v1213_v0  ;;  %v446_v59 = vpop.f32.mrb[17].mxu0 }
 0x11b   : > { %v447_v60 = vadd.f32 %v1213_v0, %v446_v59  ;;  %v989_v61 = vpop.f32.mrb[18].mxu0  ;;  %1030 = vmatprep.mubr.bf16.mxu1 %v547_v56 }
 0x11c   : > { %v458_v62 = vadd.f32 %v989_v61, %v1213_v0  ;;  %v449_v63 = vpop.f32.mrb[19].mxu0  ;;  %1031 = vmatmul.mubr.bf16.gmra.mrb[12].mxu1 %v548_v55  ;;  %v527_v2 = vmax.f32 %v455_v58, 0.0 }
 0x11d   : > { %v450_v1 = vadd.f32 %v1213_v0, %v449_v63  ;;  %v525_v4 = vmax.f32 %v447_v60, 0.0 }
 0x11e   : > { %v528_v3 = vmax.f32 %v458_v62, 0.0 }
 0x11f   : > { %v526_v5 = vmax.f32 %v450_v1, 0.0 }
 0x120   : > { %v550_v6 = vpack.c.bf16 %v528_v3, %v527_v2 }
 0x121   : > { %v549_v7 = vpack.c.bf16 %v526_v5, %v525_v4  ;;  %v992_v8 = vpop.f32.mrb[20].mxu0 }
 0x122   : > { %v471_v9 = vadd.f32 %v992_v8, %v1213_v0  ;;  %v462_v10 = vpop.f32.mrb[21].mxu0 }
 0x123   : > { %v463_v11 = vadd.f32 %v1213_v0, %v462_v10  ;;  %v993_v12 = vpop.f32.mrb[22].mxu0  ;;  %1034 = vmatprep.mubr.bf16.mxu1 %v549_v7 }
 0x124   : > { %v474_v13 = vadd.f32 %v993_v12, %v1213_v0  ;;  %v465_v14 = vpop.f32.mrb[23].mxu0  ;;  %1035 = vmatmul.mubr.bf16.gmra.mrb[16].mxu1 %v550_v6  ;;  %v531_v16 = vmax.f32 %v471_v9, 0.0 }
 0x125   : > { %v466_v15 = vadd.f32 %v1213_v0, %v465_v14  ;;  %v529_v18 = vmax.f32 %v463_v11, 0.0 }
 0x126   : > { %v532_v17 = vmax.f32 %v474_v13, 0.0 }
 0x127   : > { %v530_v19 = vmax.f32 %v466_v15, 0.0 }
 0x128   : > { %v552_v20 = vpack.c.bf16 %v532_v17, %v531_v16 }
 0x129   : > { %v551_v21 = vpack.c.bf16 %v530_v19, %v529_v18  ;;  %v996_v22 = vpop.f32.mrb[24].mxu0 }
 0x12a   : > { %v487_v23 = vadd.f32 %v996_v22, %v1213_v0  ;;  %v478_v24 = vpop.f32.mrb[25].mxu0 }
 0x12b   : > { %v479_v25 = vadd.f32 %v1213_v0, %v478_v24  ;;  %v997_v26 = vpop.f32.mrb[26].mxu0  ;;  %1038 = vmatprep.mubr.bf16.mxu1 %v551_v21 }
 0x12c   : > { %v490_v27 = vadd.f32 %v997_v26, %v1213_v0  ;;  %v481_v28 = vpop.f32.mrb[27].mxu0  ;;  %1039 = vmatmul.mubr.bf16.gmra.mrb[20].mxu1 %v552_v20  ;;  %v535_v30 = vmax.f32 %v487_v23, 0.0 }
 0x12d   : > { %v482_v29 = vadd.f32 %v1213_v0, %v481_v28  ;;  %v533_v32 = vmax.f32 %v479_v25, 0.0 }
 0x12e   : > { %v536_v31 = vmax.f32 %v490_v27, 0.0 }
 0x12f   : > { %v534_v33 = vmax.f32 %v482_v29, 0.0 }
 0x130   : > { %v554_v34 = vpack.c.bf16 %v536_v31, %v535_v30 }
 0x131   : > { %v553_v35 = vpack.c.bf16 %v534_v33, %v533_v32  ;;  %v1000_v36 = vpop.f32.mrb[28].mxu0 }
 0x132   : > { %v503_v37 = vadd.f32 %v1000_v36, %v1213_v0  ;;  %v494_v38 = vpop.f32.mrb[29].mxu0 }
 0x133   : > { %v495_v39 = vadd.f32 %v1213_v0, %v494_v38  ;;  %v1001_v40 = vpop.f32.mrb[30].mxu0  ;;  %1042 = vmatprep.mubr.bf16.mxu1 %v553_v35 }
 0x134   : > { %v506_v41 = vadd.f32 %v1001_v40, %v1213_v0  ;;  %v497_v42 = vpop.f32.mrb[31].mxu0  ;;  %1043 = vmatmul.mubr.bf16.gmra.mrb[24].mxu1 %v554_v34  ;;  %v539_v44 = vmax.f32 %v503_v37, 0.0 }
 0x135   : > { %v498_v43 = vadd.f32 %v1213_v0, %v497_v42  ;;  %v537_v46 = vmax.f32 %v495_v39, 0.0 }
 0x136   : > { %v540_v45 = vmax.f32 %v506_v41, 0.0 }
 0x137   : > { %v538_v47 = vmax.f32 %v498_v43, 0.0 }
 0x138   : > { %v556_v48 = vpack.c.bf16 %v540_v45, %v539_v44 }
 0x139   : > { %v555_v49 = vpack.c.bf16 %v538_v47, %v537_v46 }
 0x13b   : > { %1046 = vmatprep.mubr.bf16.mxu1 %v555_v49 }
 0x13c   : > { %1047 = vmatmul.mubr.bf16.gmra.mrb[28].mxu1 %v556_v48 }
 0x1d7   : > { %v1020_v0 = vpop.f32.mrb[0].mxu1 }
 0x1d8   : > { %v671_v51 = vadd.f32 %v1020_v0, %v1250_v50  ;;  %v662_v52 = vpop.f32.mrb[1].mxu1 }
 0x1d9   : > { %v663_v53 = vadd.f32 %v1250_v50, %v662_v52  ;;  %v1021_v54 = vpop.f32.mrb[2].mxu1 }
 0x1da   : > { %791 = vst [vmem:[%s1257_s16 + $0x10] sm:$0xff] %v671_v51  ;;  %v674_v55 = vadd.f32 %v1021_v54, %v1250_v50  ;;  %v665_v56 = vpop.f32.mrb[3].mxu1 }
 0x1db   : > { %789 = vst [vmem:[%s1257_s16] sm:$0xff] %v663_v53  ;;  %v666_v57 = vadd.f32 %v1250_v50, %v665_v56 }
 0x1dc   : > { %792 = vst [vmem:[%s1257_s16 + $0x18] sm:$0xff] %v674_v55 }
 0x1dd   : > { %790 = vst [vmem:[%s1257_s16 + $0x8] sm:$0xff] %v666_v57 }
 0x1df   : > { %v1024_v58 = vpop.f32.mrb[4].mxu1 }
 0x1e0   : > { %v687_v59 = vadd.f32 %v1024_v58, %v1250_v50  ;;  %v678_v60 = vpop.f32.mrb[5].mxu1 }
 0x1e1   : > { %v679_v61 = vadd.f32 %v1250_v50, %v678_v60  ;;  %v1025_v62 = vpop.f32.mrb[6].mxu1 }
 0x1e2   : > { %795 = vst [vmem:[%s1257_s16 + $0x30] sm:$0xff] %v687_v59  ;;  %v690_v63 = vadd.f32 %v1025_v62, %v1250_v50  ;;  %v681_v1 = vpop.f32.mrb[7].mxu1 }
 0x1e3   : > { %793 = vst [vmem:[%s1257_s16 + $0x20] sm:$0xff] %v679_v61  ;;  %v682_v2 = vadd.f32 %v1250_v50, %v681_v1 }
 0x1e4   : > { %796 = vst [vmem:[%s1257_s16 + $0x38] sm:$0xff] %v690_v63 }
 0x1e5   : > { %794 = vst [vmem:[%s1257_s16 + $0x28] sm:$0xff] %v682_v2 }
 0x1e7   : > { %v1028_v3 = vpop.f32.mrb[8].mxu1 }
 0x1e8   : > { %v703_v4 = vadd.f32 %v1028_v3, %v1250_v50  ;;  %v694_v5 = vpop.f32.mrb[9].mxu1 }
 0x1e9   : > { %v695_v6 = vadd.f32 %v1250_v50, %v694_v5  ;;  %v1029_v7 = vpop.f32.mrb[10].mxu1 }
 0x1ea   : > { %799 = vst [vmem:[%s1257_s16 + $0x50] sm:$0xff] %v703_v4  ;;  %v706_v8 = vadd.f32 %v1029_v7, %v1250_v50  ;;  %v697_v9 = vpop.f32.mrb[11].mxu1 }
 0x1eb   : > { %797 = vst [vmem:[%s1257_s16 + $0x40] sm:$0xff] %v695_v6  ;;  %v698_v10 = vadd.f32 %v1250_v50, %v697_v9 }
 0x1ec   : > { %800 = vst [vmem:[%s1257_s16 + $0x58] sm:$0xff] %v706_v8 }
 0x1ed   : > { %798 = vst [vmem:[%s1257_s16 + $0x48] sm:$0xff] %v698_v10 }
 0x1ef   : > { %v1032_v11 = vpop.f32.mrb[12].mxu1 }
 0x1f0   : > { %v719_v12 = vadd.f32 %v1032_v11, %v1250_v50  ;;  %v710_v13 = vpop.f32.mrb[13].mxu1 }
 0x1f1   : > { %v711_v14 = vadd.f32 %v1250_v50, %v710_v13  ;;  %v1033_v15 = vpop.f32.mrb[14].mxu1 }
 0x1f2   : > { %803 = vst [vmem:[%s1257_s16 + $0x70] sm:$0xff] %v719_v12  ;;  %v722_v16 = vadd.f32 %v1033_v15, %v1250_v50  ;;  %v713_v17 = vpop.f32.mrb[15].mxu1 }
 0x1f3   : > { %801 = vst [vmem:[%s1257_s16 + $0x60] sm:$0xff] %v711_v14  ;;  %v714_v18 = vadd.f32 %v1250_v50, %v713_v17 }
 0x1f4   : > { %804 = vst [vmem:[%s1257_s16 + $0x78] sm:$0xff] %v722_v16 }
 0x1f5   : > { %802 = vst [vmem:[%s1257_s16 + $0x68] sm:$0xff] %v714_v18 }
 0x1f7   : > { %v1036_v19 = vpop.f32.mrb[16].mxu1 }
 0x1f8   : > { %v735_v20 = vadd.f32 %v1036_v19, %v1250_v50  ;;  %v726_v21 = vpop.f32.mrb[17].mxu1 }
 0x1f9   : > { %v727_v22 = vadd.f32 %v1250_v50, %v726_v21  ;;  %v1037_v23 = vpop.f32.mrb[18].mxu1 }
 0x1fa   : > { %807 = vst [vmem:[%s1257_s16 + $0x90] sm:$0xff] %v735_v20  ;;  %v738_v24 = vadd.f32 %v1037_v23, %v1250_v50  ;;  %v729_v25 = vpop.f32.mrb[19].mxu1 }
 0x1fb   : > { %805 = vst [vmem:[%s1257_s16 + $0x80] sm:$0xff] %v727_v22  ;;  %v730_v26 = vadd.f32 %v1250_v50, %v729_v25 }
 0x1fc   : > { %808 = vst [vmem:[%s1257_s16 + $0x98] sm:$0xff] %v738_v24 }
 0x1fd   : > { %806 = vst [vmem:[%s1257_s16 + $0x88] sm:$0xff] %v730_v26 }
 0x1ff   : > { %v1040_v27 = vpop.f32.mrb[20].mxu1 }
 0x200   : > { %v751_v28 = vadd.f32 %v1040_v27, %v1250_v50  ;;  %v742_v29 = vpop.f32.mrb[21].mxu1 }
 0x201   : > { %v743_v30 = vadd.f32 %v1250_v50, %v742_v29  ;;  %v1041_v31 = vpop.f32.mrb[22].mxu1 }
 0x202   : > { %811 = vst [vmem:[%s1257_s16 + $0xb0] sm:$0xff] %v751_v28  ;;  %v754_v32 = vadd.f32 %v1041_v31, %v1250_v50  ;;  %v745_v33 = vpop.f32.mrb[23].mxu1 }
 0x203   : > { %809 = vst [vmem:[%s1257_s16 + $0xa0] sm:$0xff] %v743_v30  ;;  %v746_v34 = vadd.f32 %v1250_v50, %v745_v33 }
 0x204   : > { %812 = vst [vmem:[%s1257_s16 + $0xb8] sm:$0xff] %v754_v32 }
 0x205   : > { %810 = vst [vmem:[%s1257_s16 + $0xa8] sm:$0xff] %v746_v34 }
 0x207   : > { %v1044_v35 = vpop.f32.mrb[24].mxu1 }
 0x208   : > { %v767_v36 = vadd.f32 %v1044_v35, %v1250_v50  ;;  %v758_v37 = vpop.f32.mrb[25].mxu1 }
 0x209   : > { %v759_v38 = vadd.f32 %v1250_v50, %v758_v37  ;;  %v1045_v39 = vpop.f32.mrb[26].mxu1 }
 0x20a   : > { %815 = vst [vmem:[%s1257_s16 + $0xd0] sm:$0xff] %v767_v36  ;;  %v770_v40 = vadd.f32 %v1045_v39, %v1250_v50  ;;  %v761_v41 = vpop.f32.mrb[27].mxu1 }
 0x20b   : > { %813 = vst [vmem:[%s1257_s16 + $0xc0] sm:$0xff] %v759_v38  ;;  %v762_v42 = vadd.f32 %v1250_v50, %v761_v41 }
 0x20c   : > { %816 = vst [vmem:[%s1257_s16 + $0xd8] sm:$0xff] %v770_v40 }
 0x20d   : > { %814 = vst [vmem:[%s1257_s16 + $0xc8] sm:$0xff] %v762_v42 }
 0x20f   : > { %v1048_v43 = vpop.f32.mrb[28].mxu1 }
 0x210   : > { %v783_v44 = vadd.f32 %v1048_v43, %v1250_v50  ;;  %v774_v45 = vpop.f32.mrb[29].mxu1 }
 0x211   : > { %v775_v46 = vadd.f32 %v1250_v50, %v774_v45  ;;  %v1049_v47 = vpop.f32.mrb[30].mxu1 }
 0x212   : > { %819 = vst [vmem:[%s1257_s16 + $0xf0] sm:$0xff] %v783_v44  ;;  %v786_v48 = vadd.f32 %v1049_v47, %v1250_v50  ;;  %v777_v49 = vpop.f32.mrb[31].mxu1 }
 0x213   : > { %817 = vst [vmem:[%s1257_s16 + $0xe0] sm:$0xff] %v775_v46  ;;  %v778_v0 = vadd.f32 %v1250_v50, %v777_v49 }
 0x214   : > { %820 = vst [vmem:[%s1257_s16 + $0xf8] sm:$0xff] %v786_v48 }
 0x215   : > { %818 = vst [vmem:[%s1257_s16 + $0xe8] sm:$0xff] %v778_v0 }
 0x216 PF: > { %s15_s18 = sadd.s32 1, %s1080_s18  }
 0x217   : > { %p12_p4 = scmp.ge.s32.totalorder %s15_s18, 4  }
 0x219   :  { %14 = sbr.rel (!%p12_p4) target bundleno = 1 (0x1), region = 70 }

</bundles_post_ra>
